<compile_context>
chip_gen: v7x
topology: tpu7x:2x2x1
jax: 0.10.0
libtpu: 0.0.40
codegen_flags: <defaults>
</compile_context>

<pallas_src>
import functools

import jax
import jax.numpy as jnp
from jax.experimental import pallas as pl
from jax.experimental.pallas import tpu as pltpu


_PER_BUFFER_BYTES = 8 * 1024 * 1024   # ~8 MiB per pipelined input buffer
_MAX_TILE_ROWS = 2048                 # keep padding waste / VMEM bounded
_MAX_SINGLE_HW = 16384                # below this, take the whole map per step
_VMEM_LIMIT_BYTES = 32 * 1024 * 1024  # safe on v5e/v6e/v7x (v7x scoped default)


def _concat_pool_kernel(x_ref, out_ref, max_acc, sum_acc, *, inv_hw):
    """Grid step: row-tile i (parallel axis 0), HW chunk k (arbitrary axis 1)."""
    k = pl.program_id(1)

    @pl.when(k == 0)
    def _init():
        max_acc[...] = jnp.full_like(max_acc, -jnp.inf)
        sum_acc[...] = jnp.zeros_like(sum_acc)

    # Accumulate in f32 regardless of input dtype (precision; v5e has no bf16 VPU).
    x = x_ref[...].astype(jnp.float32)
    max_acc[...] = jnp.maximum(max_acc[...], jnp.max(x, axis=-1, keepdims=True))
    sum_acc[...] = sum_acc[...] + jnp.sum(x, axis=-1, keepdims=True)

    @pl.when(k == pl.num_programs(1) - 1)
    def _finalize():
        out_ref[...] = jnp.concatenate(
            [max_acc[...], sum_acc[...] * inv_hw], axis=-1
        ).astype(out_ref.dtype)


def _round_up(v, m):
    return ((v + m - 1) // m) * m


def _pick_tile_hw(hw):
    """HW chunk size: either the full map, or a 128-multiple divisor of hw."""
    if hw <= _MAX_SINGLE_HW:
        return hw
    for cand in (8192, 4096, 2048, 1024, 512, 256, 128):
        if hw % cand == 0:
            return cand
    return hw  # no clean 128-multiple divisor; take the whole map per step


def adaptive_concat_pool2d(x):
    """x: (N, C, H, W) -> (N, 2*C, 1, 1), channels = [max_pool, avg_pool]."""
    N, C, H, W = x.shape
    rows = N * C
    hw = H * W
    dtype = x.dtype
    itemsize = jnp.dtype(dtype).itemsize
    # Sublane pack factor: 8 for 4-byte, 16 for 2-byte, 32 for 1-byte dtypes.
    pack = max(8, 32 // itemsize)

    tile_hw = _pick_tile_hw(hw)
    num_hw_tiles = hw // tile_hw  # exact by construction

    # Largest pack-aligned row tile that keeps one input buffer <= ~8 MiB,
    # capped at _MAX_TILE_ROWS and at the (pack-rounded) row count.
    tile_rows = _PER_BUFFER_BYTES // max(1, tile_hw * itemsize)
    tile_rows = max(pack, (tile_rows // pack) * pack)
    tile_rows = min(tile_rows, _MAX_TILE_ROWS, _round_up(rows, pack))

    rows_pad = _round_up(rows, tile_rows)
    num_row_tiles = rows_pad // tile_rows

    x2d = x.reshape(rows, hw)
    if rows_pad != rows:
        x2d = jnp.pad(x2d, ((0, rows_pad - rows), (0, 0)))

    kernel = functools.partial(_concat_pool_kernel, inv_hw=float(1.0 / hw))

    out2 = pl.pallas_call(
        kernel,
        out_shape=jax.ShapeDtypeStruct((rows_pad, 2), dtype),
        grid_spec=pltpu.PrefetchScalarGridSpec(
            num_scalar_prefetch=0,
            grid=(num_row_tiles, num_hw_tiles),
            in_specs=[pl.BlockSpec((tile_rows, tile_hw), lambda i, k: (i, k))],
            out_specs=pl.BlockSpec((tile_rows, 2), lambda i, k: (i, 0)),
            scratch_shapes=[
                pltpu.VMEM((tile_rows, 1), jnp.float32),  # running max
                pltpu.VMEM((tile_rows, 1), jnp.float32),  # running sum
            ],
        ),
        compiler_params=pltpu.CompilerParams(
            dimension_semantics=("parallel", "arbitrary"),
            vmem_limit_bytes=_VMEM_LIMIT_BYTES,
        ),
    )(x2d)

    out2 = out2[:rows]                              # (rows, 2): [max, avg] per row
    out = out2.reshape(N, C, 2).transpose(0, 2, 1)  # (N, 2, C)
    return out.reshape(N, 2 * C, 1, 1)


if __name__ == "__main__":
    def ref_pool(x):
        return jnp.concatenate(
            [jnp.max(x, axis=(2, 3), keepdims=True),
             jnp.mean(x, axis=(2, 3), keepdims=True)],
            axis=1,
        )

    key = jax.random.PRNGKey(0)
    k0, k1, k2 = jax.random.split(key, 3)

    # Spec-sized check (N=2, C=4, H=W=16).
    x = jax.random.normal(k0, (2, 4, 16, 16), dtype=jnp.float32)
    out = adaptive_concat_pool2d(x)
    jax.block_until_ready(out)
    assert out.shape == (2, 8, 1, 1), out.shape
    assert jnp.allclose(out, ref_pool(x), atol=1e-5, rtol=1e-5)

    # Exercise the chunked-HW accumulation path (hw > single-chunk threshold).
    x2 = jax.random.normal(k1, (2, 4, 160, 160), dtype=jnp.float32)
    out2 = adaptive_concat_pool2d(x2)
    jax.block_until_ready(out2)
    assert out2.shape == (2, 8, 1, 1), out2.shape
    assert jnp.allclose(out2, ref_pool(x2), atol=1e-4, rtol=1e-4)

    # Exercise the row-padding path (rows not a multiple of the row tile).
    x3 = jax.random.normal(k2, (3, 3, 16, 16), dtype=jnp.float32)
    out3 = adaptive_concat_pool2d(x3)
    jax.block_until_ready(out3)
    assert out3.shape == (3, 6, 1, 1), out3.shape
    assert jnp.allclose(out3, ref_pool(x3), atol=1e-5, rtol=1e-5)

    print("KERNEL_OK")
</pallas_src>

<mosaic_0001>
module attributes {stable_mosaic.version = 11 : i64} {
  func.func @_concat_pool_kernel(%arg0: i32, %arg1: i32, %arg2: memref<8x256xf32, #tpu.memory_space<vmem>>, %arg3: memref<8x2xf32, #tpu.memory_space<vmem>>, %arg4: memref<8x1xf32, #tpu.memory_space<vmem>>, %arg5: memref<8x1xf32, #tpu.memory_space<vmem>>) attributes {dimension_semantics = [#tpu.dimension_semantics<parallel>, #tpu.dimension_semantics<arbitrary>], iteration_bounds = array<i64: 1, 1>, scalar_prefetch = 0 : i64, scratch_operands = 2 : i64, tpu.core_type = #tpu.core_type<tc>, window_params = [{transform_indices = @transform_0, window_bounds = array<i64: 8, 256>}, {transform_indices = @transform_1, window_bounds = array<i64: 8, 2>}]} {
    %c0_i32 = arith.constant 0 : i32
    %0 = arith.cmpi eq, %arg1, %c0_i32 : i32
    %1 = arith.extui %0 : i1 to i32
    %c0_i32_0 = arith.constant 0 : i32
    %2 = arith.cmpi ne, %1, %c0_i32_0 : i32
    scf.if %2 {
      %cst_13 = arith.constant 0xFF800000 : f32
      %17 = vector.broadcast %cst_13 : f32 to vector<8x1xf32>
      %c0_14 = arith.constant 0 : index
      %c0_15 = arith.constant 0 : index
      %18 = vector.load %arg4[%c0_14, %c0_15] : memref<8x1xf32, #tpu.memory_space<vmem>>, vector<8x1xf32>
      tpu.vector_store %arg4[%c0_14, %c0_15], %17 {strides = array<i32>} : memref<8x1xf32, #tpu.memory_space<vmem>>, vector<8x1xf32>,
      %cst_16 = arith.constant 0.000000e+00 : f32
      %19 = vector.broadcast %cst_16 : f32 to vector<8x1xf32>
      %c0_17 = arith.constant 0 : index
      %c0_18 = arith.constant 0 : index
      %20 = vector.load %arg5[%c0_17, %c0_18] : memref<8x1xf32, #tpu.memory_space<vmem>>, vector<8x1xf32>
      tpu.vector_store %arg5[%c0_17, %c0_18], %19 {strides = array<i32>} : memref<8x1xf32, #tpu.memory_space<vmem>>, vector<8x1xf32>,
    } else {
    }
    %c0 = arith.constant 0 : index
    %c0_1 = arith.constant 0 : index
    %3 = vector.load %arg2[%c0, %c0_1] : memref<8x256xf32, #tpu.memory_space<vmem>>, vector<8x256xf32>
    %c0_2 = arith.constant 0 : index
    %c0_3 = arith.constant 0 : index
    %4 = vector.load %arg4[%c0_2, %c0_3] : memref<8x1xf32, #tpu.memory_space<vmem>>, vector<8x1xf32>
    %cst = arith.constant dense<0xFF800000> : vector<8xf32>
    %5 = vector.multi_reduction <maximumf>, %3, %cst [1] : vector<8x256xf32> to vector<8xf32>
    %6 = vector.shape_cast %5 : vector<8xf32> to vector<8x1xf32>
    %7 = arith.maximumf %4, %6 : vector<8x1xf32>
    %c0_4 = arith.constant 0 : index
    %c0_5 = arith.constant 0 : index
    %8 = vector.load %arg4[%c0_4, %c0_5] : memref<8x1xf32, #tpu.memory_space<vmem>>, vector<8x1xf32>
    tpu.vector_store %arg4[%c0_4, %c0_5], %7 {strides = array<i32>} : memref<8x1xf32, #tpu.memory_space<vmem>>, vector<8x1xf32>,
    %c0_6 = arith.constant 0 : index
    %c0_7 = arith.constant 0 : index
    %9 = vector.load %arg5[%c0_6, %c0_7] : memref<8x1xf32, #tpu.memory_space<vmem>>, vector<8x1xf32>
    %cst_8 = arith.constant dense<0.000000e+00> : vector<8xf32>
    %10 = vector.multi_reduction <add>, %3, %cst_8 [1] : vector<8x256xf32> to vector<8xf32>
    %11 = vector.shape_cast %10 : vector<8xf32> to vector<8x1xf32>
    %12 = arith.addf %9, %11 : vector<8x1xf32>
    %c0_9 = arith.constant 0 : index
    %c0_10 = arith.constant 0 : index
    %13 = vector.load %arg5[%c0_9, %c0_10] : memref<8x1xf32, #tpu.memory_space<vmem>>, vector<8x1xf32>
    tpu.vector_store %arg5[%c0_9, %c0_10], %12 {strides = array<i32>} : memref<8x1xf32, #tpu.memory_space<vmem>>, vector<8x1xf32>,
    %c0_i32_11 = arith.constant 0 : i32
    %14 = arith.cmpi eq, %arg1, %c0_i32_11 : i32
    %15 = arith.extui %14 : i1 to i32
    %c0_i32_12 = arith.constant 0 : i32
    %16 = arith.cmpi ne, %15, %c0_i32_12 : i32
    scf.if %16 {
      %c0_13 = arith.constant 0 : index
      %c0_14 = arith.constant 0 : index
      %17 = vector.load %arg4[%c0_13, %c0_14] : memref<8x1xf32, #tpu.memory_space<vmem>>, vector<8x1xf32>
      %c0_15 = arith.constant 0 : index
      %c0_16 = arith.constant 0 : index
      %18 = vector.load %arg5[%c0_15, %c0_16] : memref<8x1xf32, #tpu.memory_space<vmem>>, vector<8x1xf32>
      %cst_17 = arith.constant 3.906250e-03 : f32
      %19 = vector.broadcast %cst_17 : f32 to vector<8x1xf32>
      %20 = arith.mulf %18, %19 : vector<8x1xf32>
      %21 = tpu.concatenate %17, %20 in 1 : vector<8x1xf32>, vector<8x1xf32> -> vector<8x2xf32>
      %c0_18 = arith.constant 0 : index
      %c0_19 = arith.constant 0 : index
      %22 = vector.load %arg3[%c0_18, %c0_19] : memref<8x2xf32, #tpu.memory_space<vmem>>, vector<8x2xf32>
      tpu.vector_store %arg3[%c0_18, %c0_19], %21 {strides = array<i32>} : memref<8x2xf32, #tpu.memory_space<vmem>>, vector<8x2xf32>,
    } else {
    }
    return
  }
  func.func @transform_0(%arg0: i32, %arg1: i32) -> (i32, i32) {
    %c0_i32 = arith.constant 0 : i32
    return %arg0, %arg1 : i32, i32
  }
  func.func @transform_1(%arg0: i32, %arg1: i32) -> (i32, i32) {
    %c0_i32 = arith.constant 0 : i32
    %c0_i32_0 = arith.constant 0 : i32
    return %arg0, %c0_i32 : i32, i32
  }
}

</mosaic_0001>

<bundles_post_ra>
// kernel: tpu_custom_call.1
= control target key start
LH: loop header
LB: loop body
LE: loop exit
PB: predicated region body
PF: predicated region fallthrough
CT: control target
= control target key end

     0   :  { %6 = vsyncpa [#allocation5], 0  ;;  %s88_s6 = smov [#allocation4]   ;;  %s122_s0 = inlined_call_operand.hbm [shape: f32[8,256], index: 0, kind: input, shape index: {}]   ;;  %s123_s1 = inlined_call_operand.vmem [shape: f32[8,2], index: 1, kind: output, shape index: {}]  }
   0x1   :  { %s13_s7 = sshll.u32 %s88_s6, 4  ;;  %s64_s10 = scalar_lea.hbm %s122_s0, 256  ;;  %s14_s7 = int_to_ptr.vmem [resolvable:$true] %s13_s7 }
   0x2   :  { %p65_p0 = scmp.ne.s32.totalorder %s122_s0, %s64_s10  ;;  %p68_p1 = scmp.lt.u32.totalorder %s64_s10, %s122_s0 }
   0x4   :  { %p70_p2 = pnand %p68_p1, %p65_p0 }
   0x6   :  { %73 = shalt.err (!%p70_p2)
}
   0x7   :  { %s74_s15 = scalar_lea.vmem %s14_s7, 256  ;;  %p79_p4 = scmp.lt.s32.totalorder %s14_s7, %s14_s7 }
   0x8   :  { %p75_p3 = scmp.ne.s32.totalorder %s14_s7, %s74_s15  ;;  %p80_p5 = scmp.lt.s32.totalorder %s74_s15, %s74_s15 }
   0xa   :  { %p81_p6 = por %p80_p5, %p79_p4 }
   0xc   :  { %p82_p7 = pnand %p81_p6, %p75_p3 }
   0xe   :  { %85 = shalt.err (!%p82_p7)
}
   0xf   :  { %16 = dma.hbm_to_vmem [thread:$0]  %s122_s0, 256, %s14_s7, [#allocation5]  }
  0x10   :  { %86 = dma.done.wait [#allocation5], 256  }
  0x11   :  { %87 = vsyncadd [#allocation5], 4294967040  ;;  %vm24_vm0 = vcmask 7168   ;;  %v89_v0 = vmov 0.0   ;;  %v27_v1 = vld [vmem:[#allocation4] sm:$0xff]  ;;  %v28_v2 = vld [vmem:[#allocation4 + $0x8] sm:$0xff] }
  0x12   :  { %26 = vst.msk [vmem:[#allocation3] sm:$0xff] %vm24_vm0, %v89_v0  ;;  %v37_v3 = vadd.f32 %v28_v2, %v27_v1  ;;  %v30_v4 = vmax.f32 %v27_v1, %v28_v2  ;;  %v90_v5 = vmov -inf   ;;  %s91_s0 = smov 1   ;;  %vm53_vm1 = vcmask 15360  }
  0x13   :  { %25 = vst.msk [vmem:[#allocation2] sm:$0xff] %vm24_vm0, %v90_v5 }
  0x14   :  { %38 = vadd.xlane.f32.xlu0 %v37_v3 }
  0x18   :  { %31 = vmax.xlane.f32.xlu0 %v30_v4 }
  0x19   :  { %v36_v6 = vld [vmem:[#allocation3] sm:$0xff] }
  0x1a   :  { %v29_v9 = vld [vmem:[#allocation2] sm:$0xff] }
  0xa1   :  { %v39_v7 = vpop.xlane.xlu0 %38 }
  0xa2   :  { %v40_v8 = vadd.f32 %v39_v7, %v36_v6 }
  0xa4   :  { %41 = vst.msk [vmem:[#allocation3] sm:$0xff] %vm24_vm0, %v40_v8 }
  0xa5   :  { %v32_v10 = vpop.xlane.xlu0 %31 }
  0xa6   :  { %v33_v11 = vmax.f32 %v29_v9, %v32_v10 }
  0xa8   :  { %35 = vst.msk [vmem:[#allocation2] sm:$0xff] %vm24_vm0, %v33_v11 }
  0xab   :  { %v46_v12 = vld [vmem:[#allocation3] sm:$0xff] }
  0xac   :  { %v47_v13 = vmul.f32 0.00390625, %v46_v12 }
  0xae   :  { %49 = vrot.lane.b32.xlu1 %v47_v13, %s91_s0 }
  0xaf   :  { %v45_v14 = vld [vmem:[#allocation2] sm:$0xff] }
 0x120   :  { %v50_v15 = vpop.permute.xlu1 %49 }
 0x121   :  { %v52_v16 = vsel %vm24_vm0, %v45_v14, %v50_v15 }
 0x122   :  { %54 = vst.msk [vmem:[%s123_s1] sm:$0xff] %vm53_vm1, %v52_v16 }
 0x123   :  { %59 = vsyncpa [#allocation5], 1 }

</bundles_post_ra>
